<compile_context>
chip_gen: v6e
topology: v6e:2x2x1
jax: 0.10.0
libtpu: 0.0.40
codegen_flags: <defaults>
</compile_context>

<pallas_src>
import functools

import jax
import jax.numpy as jnp
from jax.experimental import pallas as pl
from jax.experimental.pallas import tpu as pltpu


def _mod_const(a, m):
    """a mod m for a static positive int m (bitwise-and when m is a power of 2)."""
    if m & (m - 1) == 0:
        return a & (m - 1)
    return a % m


def _gauge_kernel(grid_size, nodes, batch_tile,
                  x_ref, wemb_ref, bemb_ref, whid_ref, bhid_ref,
                  wpost_ref, bpost_ref, o_ref):
    G, N, TB = grid_size, nodes, batch_tile
    L = TB * N
    x = x_ref[0]                                   # (2, L) channel planes; lanes = batch*node

    # In-kernel node-coordinate masks (no extra input DMA).  p = fused lane index,
    # pn = node index within its sample, xc = node x-coordinate.
    p = jax.lax.broadcasted_iota(jnp.int32, (1, L), 1)
    pn = _mod_const(p, N)
    xc = _mod_const(p, G)
    x_first = xc == 0                              # left  wrap column
    x_last = xc == G - 1                           # right wrap column
    y_first = pn < G                               # bottom wrap row (y == 0)
    y_last = pn >= N - G                           # top    wrap row (y == G-1)

    def roll_l(shift):
        # pltpu.roll matches jnp.roll semantics; keep the static shift in [0, L).
        return pltpu.roll(x, shift % L, axis=1)

    # Periodic neighbour gathers == XLU lane rotations on the fused axis, with a
    # masked fix-up wherever the plain roll would cross a grid (or batch) seam.
    up    = jnp.where(y_last,  roll_l(N - G),    roll_l(-G))
    down  = jnp.where(y_first, roll_l(-(N - G)), roll_l(G))
    left  = jnp.where(x_first, roll_l(-(G - 1)), roll_l(1))
    right = jnp.where(x_last,  roll_l(G - 1),    roll_l(-1))

    # Per-node <x, neighbour> dot products (H = eye(2)): lane-parallel VPU work.
    s_up    = jnp.sum(x * up,    axis=0, keepdims=True)       # (1, L)
    s_down  = jnp.sum(x * down,  axis=0, keepdims=True)
    s_left  = jnp.sum(x * left,  axis=0, keepdims=True)
    s_right = jnp.sum(x * right, axis=0, keepdims=True)
    s4 = jnp.concatenate([s_up, s_down, s_left, s_right], axis=0)   # (4, L)

    # emb + hidden: MXU matmuls with f32 accumulation; nodes/batch stay on lanes.
    h = jnp.dot(wemb_ref[...], s4, preferred_element_type=jnp.float32) + bemb_ref[...]
    h = jnp.maximum(h, 0.0)                                          # (hid, L)
    h = jnp.dot(whid_ref[...], h, preferred_element_type=jnp.float32) + bhid_ref[...]
    h = jnp.maximum(h, 0.0)                                          # (hid, L)

    # post projection per node, then the per-sample node sum as one MXU matmul
    # against a 0/1 segment-indicator matrix (keeps lanes dense, avoids any
    # lane->sublane relayout, and yields a single (out_dim, TB) store per step).
    po = jnp.dot(wpost_ref[...], h, preferred_element_type=jnp.float32) + bpost_ref[...]
    row = jax.lax.broadcasted_iota(jnp.int32, (L, TB), 0)
    col = jax.lax.broadcasted_iota(jnp.int32, (L, TB), 1)
    lo = col * N
    seg = ((row >= lo) & (row < lo + N)).astype(jnp.float32)         # (L, TB)
    o_ref[0] = jnp.dot(po, seg, preferred_element_type=jnp.float32)  # (out_dim, TB)


def gauge_net_forward(x, params, grid_size, *, batch_tile=None):
    """x: (B, N, 2) with N = grid_size**2. Returns (B, out_dim)."""
    B, N, C = x.shape
    G = grid_size
    assert N == G * G and C == 2
    wemb, bemb, whid, bhid, wpost, bpost = params
    hid = whid.shape[0]
    out_dim = wpost.shape[0]

    if batch_tile is None:
        # Aim for >= 256 fused lanes per step (fills an MXU pass on v6e/v7x;
        # a multiple of 128 already saturates a v5e pass).
        batch_tile = max(1, min(B, pl.cdiv(256, N)))
    TB = batch_tile
    S = pl.cdiv(B, TB)
    Bp = S * TB
    if Bp != B:                                    # pad batch to a multiple of TB
        x = jnp.concatenate([x, jnp.zeros((Bp - B, N, C), x.dtype)], axis=0)

    # (Bp, N, 2) -> (S, 2, TB*N): channel planes with TB samples fused on lanes.
    xf = (x.transpose(0, 2, 1)
            .reshape(S, TB, 2, N)
            .transpose(0, 2, 1, 3)
            .reshape(S, 2, TB * N))

    def const(shape):  # whole-array block, VMEM-resident across all grid steps
        return pl.BlockSpec(shape, lambda s, _n=len(shape): (0,) * _n)

    out3 = pl.pallas_call(
        functools.partial(_gauge_kernel, G, N, TB),
        out_shape=jax.ShapeDtypeStruct((S, out_dim, TB), jnp.float32),
        grid=(S,),
        in_specs=[
            pl.BlockSpec((1, 2, TB * N), lambda s: (s, 0, 0)),   # fused x planes
            const((hid, 4)),                                     # emb.weight
            const((hid, 1)),                                     # emb.bias (column)
            const((hid, hid)),                                   # hidden.weight
            const((hid, 1)),                                     # hidden.bias (column)
            const((out_dim, hid)),                               # post.weight
            const((out_dim, 1)),                                 # post.bias (column)
        ],
        out_specs=pl.BlockSpec((1, out_dim, TB), lambda s: (s, 0, 0)),
        compiler_params=pltpu.CompilerParams(
            dimension_semantics=("parallel",),     # >=2 steps -> both v7x TensorCores
        ),
    )(xf, wemb, bemb, whid, bhid, wpost, bpost)

    out = out3.transpose(0, 2, 1).reshape(Bp, out_dim)
    return out[:B]


def init_params(key, hid_dim=32, out_dim=1):
    """nn.Linear-style init (U(+-1/sqrt(fan_in))), in kernel-friendly layouts."""
    ks = jax.random.split(key, 6)

    def u(k, shape, fan_in):
        bound = 1.0 / float(fan_in) ** 0.5
        return jax.random.uniform(k, shape, jnp.float32, -bound, bound)

    wemb  = u(ks[0], (hid_dim, 4), 4)                 # emb.weight      (out, in)
    bemb  = u(ks[1], (hid_dim, 1), 4)                 # emb.bias        (column)
    whid  = u(ks[2], (hid_dim, hid_dim), hid_dim)     # hidden.weight   (out, in)
    bhid  = u(ks[3], (hid_dim, 1), hid_dim)           # hidden.bias     (column)
    wpost = u(ks[4], (out_dim, hid_dim), hid_dim)     # post.weight     (out, in)
    bpost = u(ks[5], (out_dim, 1), hid_dim)           # post.bias       (column)
    return (wemb, bemb, whid, bhid, wpost, bpost)


def reference_forward(x, params, grid_size):
    """Pure-JAX reference mirroring the PyTorch forward (default matmul precision)."""
    B, N, C = x.shape
    G = grid_size
    g = x.reshape(B, G, G, C)                                    # [b, y, xc, c]
    x_up    = jnp.roll(g, -1, axis=1).reshape(B, N, C)
    x_down  = jnp.roll(g,  1, axis=1).reshape(B, N, C)
    x_left  = jnp.roll(g,  1, axis=2).reshape(B, N, C)
    x_right = jnp.roll(g, -1, axis=2).reshape(B, N, C)
    wemb, bemb, whid, bhid, wpost, bpost = params
    s = jnp.stack([jnp.sum(x * x_up, -1), jnp.sum(x * x_down, -1),
                   jnp.sum(x * x_left, -1), jnp.sum(x * x_right, -1)], axis=-1)
    h = jax.nn.relu(s @ wemb.T + bemb[:, 0])
    h = jax.nn.relu(h @ whid.T + bhid[:, 0])
    h = h @ wpost.T + bpost[:, 0]                                # (B, N, out_dim)
    return h.sum(axis=1)


if __name__ == "__main__":
    B, grid_size, hid_dim, out_dim = 8, 8, 32, 1
    N = grid_size * grid_size

    key = jax.random.PRNGKey(0)
    kx, kp = jax.random.split(key)
    x = jax.random.normal(kx, (B, N, 2), dtype=jnp.float32)
    params = init_params(kp, hid_dim=hid_dim, out_dim=out_dim)

    out = jax.block_until_ready(gauge_net_forward(x, params, grid_size))
    ref = reference_forward(x, params, grid_size)

    assert out.shape == (B, out_dim), out.shape
    # MXU matmuls run at default precision (bf16 operand truncation) and the
    # node-sum is reassociated vs. the reference, hence the small slack.
    if not jnp.allclose(out, ref, rtol=2e-2, atol=2e-2):
        raise AssertionError(f"Pallas/reference mismatch:\n{out}\nvs\n{ref}")
    print("KERNEL_OK")
</pallas_src>

<mosaic_0001>
module attributes {stable_mosaic.version = 11 : i64} {
  func.func @_gauge_kernel(%arg0: i32, %arg1: memref<1x2x256xf32, #tpu.memory_space<vmem>>, %arg2: memref<32x4xf32, #tpu.memory_space<vmem>>, %arg3: memref<32x1xf32, #tpu.memory_space<vmem>>, %arg4: memref<32x32xf32, #tpu.memory_space<vmem>>, %arg5: memref<32x1xf32, #tpu.memory_space<vmem>>, %arg6: memref<1x32xf32, #tpu.memory_space<vmem>>, %arg7: memref<1x1xf32, #tpu.memory_space<vmem>>, %arg8: memref<1x1x4xf32, #tpu.memory_space<vmem>>) attributes {dimension_semantics = [#tpu.dimension_semantics<parallel>], iteration_bounds = array<i64: 2>, scalar_prefetch = 0 : i64, scratch_operands = 0 : i64, tpu.core_type = #tpu.core_type<tc>, window_params = [{transform_indices = @transform_0, window_bounds = array<i64: 1, 2, 256>}, {pipeline_mode = #tpu.pipeline_mode<synchronous>, transform_indices = @transform_1, window_bounds = array<i64: 32, 4>}, {pipeline_mode = #tpu.pipeline_mode<synchronous>, transform_indices = @transform_2, window_bounds = array<i64: 32, 1>}, {pipeline_mode = #tpu.pipeline_mode<synchronous>, transform_indices = @transform_3, window_bounds = array<i64: 32, 32>}, {pipeline_mode = #tpu.pipeline_mode<synchronous>, transform_indices = @transform_4, window_bounds = array<i64: 32, 1>}, {pipeline_mode = #tpu.pipeline_mode<synchronous>, transform_indices = @transform_5, window_bounds = array<i64: 1, 32>}, {pipeline_mode = #tpu.pipeline_mode<synchronous>, transform_indices = @transform_6, window_bounds = array<i64: 1, 1>}, {transform_indices = @transform_7, window_bounds = array<i64: 1, 1, 4>}]} {
    %c0 = arith.constant 0 : index
    %c0_0 = arith.constant 0 : index
    %c0_1 = arith.constant 0 : index
    %0 = vector.load %arg1[%c0, %c0_0, %c0_1] : memref<1x2x256xf32, #tpu.memory_space<vmem>>, vector<1x2x256xf32>
    %1 = vector.shape_cast %0 : vector<1x2x256xf32> to vector<2x256xf32>
    %2 = tpu.iota {dimensions = array<i32: 1>} : vector<1x256xi32>
    %c63_i32 = arith.constant 63 : i32
    %3 = vector.broadcast %c63_i32 : i32 to vector<1x256xi32>
    %4 = arith.andi %2, %3 : vector<1x256xi32>
    %c7_i32 = arith.constant 7 : i32
    %5 = vector.broadcast %c7_i32 : i32 to vector<1x256xi32>
    %6 = arith.andi %2, %5 : vector<1x256xi32>
    %c0_i32 = arith.constant 0 : i32
    %7 = vector.broadcast %c0_i32 : i32 to vector<1x256xi32>
    %8 = arith.cmpi eq, %6, %7 : vector<1x256xi32>
    %c7_i32_2 = arith.constant 7 : i32
    %9 = vector.broadcast %c7_i32_2 : i32 to vector<1x256xi32>
    %10 = arith.cmpi eq, %6, %9 : vector<1x256xi32>
    %c8_i32 = arith.constant 8 : i32
    %11 = vector.broadcast %c8_i32 : i32 to vector<1x256xi32>
    %12 = arith.cmpi slt, %4, %11 : vector<1x256xi32>
    %c56_i32 = arith.constant 56 : i32
    %13 = vector.broadcast %c56_i32 : i32 to vector<1x256xi32>
    %14 = arith.cmpi sge, %4, %13 : vector<1x256xi32>
    %c56_i32_3 = arith.constant 56 : i32
    %15 = tpu.dynamic_rotate %1 by %c56_i32_3 dim 1 : vector<2x256xf32>, i32 -> vector<2x256xf32>
    %c248_i32 = arith.constant 248 : i32
    %16 = tpu.dynamic_rotate %1 by %c248_i32 dim 1 : vector<2x256xf32>, i32 -> vector<2x256xf32>
    %17 = vector.shape_cast %14 : vector<1x256xi1> to vector<1x256xi1>
    %18 = vector.broadcast %17 : vector<1x256xi1> to vector<2x256xi1>
    %19 = arith.select %18, %15, %16 : vector<2x256xi1>, vector<2x256xf32>
    %c200_i32 = arith.constant 200 : i32
    %20 = tpu.dynamic_rotate %1 by %c200_i32 dim 1 : vector<2x256xf32>, i32 -> vector<2x256xf32>
    %c8_i32_4 = arith.constant 8 : i32
    %21 = tpu.dynamic_rotate %1 by %c8_i32_4 dim 1 : vector<2x256xf32>, i32 -> vector<2x256xf32>
    %22 = vector.shape_cast %12 : vector<1x256xi1> to vector<1x256xi1>
    %23 = vector.broadcast %22 : vector<1x256xi1> to vector<2x256xi1>
    %24 = arith.select %23, %20, %21 : vector<2x256xi1>, vector<2x256xf32>
    %c249_i32 = arith.constant 249 : i32
    %25 = tpu.dynamic_rotate %1 by %c249_i32 dim 1 : vector<2x256xf32>, i32 -> vector<2x256xf32>
    %c1_i32 = arith.constant 1 : i32
    %26 = tpu.dynamic_rotate %1 by %c1_i32 dim 1 : vector<2x256xf32>, i32 -> vector<2x256xf32>
    %27 = vector.shape_cast %8 : vector<1x256xi1> to vector<1x256xi1>
    %28 = vector.broadcast %27 : vector<1x256xi1> to vector<2x256xi1>
    %29 = arith.select %28, %25, %26 : vector<2x256xi1>, vector<2x256xf32>
    %c7_i32_5 = arith.constant 7 : i32
    %30 = tpu.dynamic_rotate %1 by %c7_i32_5 dim 1 : vector<2x256xf32>, i32 -> vector<2x256xf32>
    %c255_i32 = arith.constant 255 : i32
    %31 = tpu.dynamic_rotate %1 by %c255_i32 dim 1 : vector<2x256xf32>, i32 -> vector<2x256xf32>
    %32 = vector.shape_cast %10 : vector<1x256xi1> to vector<1x256xi1>
    %33 = vector.broadcast %32 : vector<1x256xi1> to vector<2x256xi1>
    %34 = arith.select %33, %30, %31 : vector<2x256xi1>, vector<2x256xf32>
    %35 = arith.mulf %1, %19 : vector<2x256xf32>
    %cst = arith.constant dense<0.000000e+00> : vector<256xf32>
    %36 = vector.multi_reduction <add>, %35, %cst [0] : vector<2x256xf32> to vector<256xf32>
    %37 = vector.shape_cast %36 : vector<256xf32> to vector<1x256xf32>
    %38 = arith.mulf %1, %24 : vector<2x256xf32>
    %cst_6 = arith.constant dense<0.000000e+00> : vector<256xf32>
    %39 = vector.multi_reduction <add>, %38, %cst_6 [0] : vector<2x256xf32> to vector<256xf32>
    %40 = vector.shape_cast %39 : vector<256xf32> to vector<1x256xf32>
    %41 = arith.mulf %1, %29 : vector<2x256xf32>
    %cst_7 = arith.constant dense<0.000000e+00> : vector<256xf32>
    %42 = vector.multi_reduction <add>, %41, %cst_7 [0] : vector<2x256xf32> to vector<256xf32>
    %43 = vector.shape_cast %42 : vector<256xf32> to vector<1x256xf32>
    %44 = arith.mulf %1, %34 : vector<2x256xf32>
    %cst_8 = arith.constant dense<0.000000e+00> : vector<256xf32>
    %45 = vector.multi_reduction <add>, %44, %cst_8 [0] : vector<2x256xf32> to vector<256xf32>
    %46 = vector.shape_cast %45 : vector<256xf32> to vector<1x256xf32>
    %47 = tpu.concatenate %37, %40, %43, %46 in 0 : vector<1x256xf32>, vector<1x256xf32>, vector<1x256xf32>, vector<1x256xf32> -> vector<4x256xf32>
    %c0_9 = arith.constant 0 : index
    %c0_10 = arith.constant 0 : index
    %48 = vector.load %arg2[%c0_9, %c0_10] : memref<32x4xf32, #tpu.memory_space<vmem>>, vector<32x4xf32>
    %cst_11 = arith.constant dense<0.000000e+00> : vector<32x256xf32>
    %49 = tpu.matmul %48, %47, %cst_11 {dimension_numbers = #tpu.dot_dimension_numbers<[1], [0], [0], [1], [0, 0, 1, 1], [], []>} : vector<32x4xf32>, vector<4x256xf32>, vector<32x256xf32> -> vector<32x256xf32>
    %c0_12 = arith.constant 0 : index
    %c0_13 = arith.constant 0 : index
    %50 = vector.load %arg3[%c0_12, %c0_13] : memref<32x1xf32, #tpu.memory_space<vmem>>, vector<32x1xf32>
    %51 = vector.broadcast %50 : vector<32x1xf32> to vector<32x256xf32>
    %52 = arith.addf %49, %51 : vector<32x256xf32>
    %cst_14 = arith.constant 0.000000e+00 : f32
    %53 = vector.broadcast %cst_14 : f32 to vector<32x256xf32>
    %54 = arith.maximumf %52, %53 : vector<32x256xf32>
    %c0_15 = arith.constant 0 : index
    %c0_16 = arith.constant 0 : index
    %55 = vector.load %arg4[%c0_15, %c0_16] : memref<32x32xf32, #tpu.memory_space<vmem>>, vector<32x32xf32>
    %cst_17 = arith.constant dense<0.000000e+00> : vector<32x256xf32>
    %56 = tpu.matmul %55, %54, %cst_17 {dimension_numbers = #tpu.dot_dimension_numbers<[1], [0], [0], [1], [0, 0, 1, 1], [], []>} : vector<32x32xf32>, vector<32x256xf32>, vector<32x256xf32> -> vector<32x256xf32>
    %c0_18 = arith.constant 0 : index
    %c0_19 = arith.constant 0 : index
    %57 = vector.load %arg5[%c0_18, %c0_19] : memref<32x1xf32, #tpu.memory_space<vmem>>, vector<32x1xf32>
    %58 = vector.broadcast %57 : vector<32x1xf32> to vector<32x256xf32>
    %59 = arith.addf %56, %58 : vector<32x256xf32>
    %cst_20 = arith.constant 0.000000e+00 : f32
    %60 = vector.broadcast %cst_20 : f32 to vector<32x256xf32>
    %61 = arith.maximumf %59, %60 : vector<32x256xf32>
    %c0_21 = arith.constant 0 : index
    %c0_22 = arith.constant 0 : index
    %62 = vector.load %arg6[%c0_21, %c0_22] : memref<1x32xf32, #tpu.memory_space<vmem>>, vector<1x32xf32>
    %cst_23 = arith.constant dense<0.000000e+00> : vector<1x256xf32>
    %63 = tpu.matmul %62, %61, %cst_23 {dimension_numbers = #tpu.dot_dimension_numbers<[1], [0], [0], [1], [0, 0, 1, 1], [], []>} : vector<1x32xf32>, vector<32x256xf32>, vector<1x256xf32> -> vector<1x256xf32>
    %c0_24 = arith.constant 0 : index
    %c0_25 = arith.constant 0 : index
    %64 = vector.load %arg7[%c0_24, %c0_25] : memref<1x1xf32, #tpu.memory_space<vmem>>, vector<1x1xf32>
    %65 = vector.broadcast %64 : vector<1x1xf32> to vector<1x256xf32>
    %66 = arith.addf %63, %65 : vector<1x256xf32>
    %67 = tpu.iota {dimensions = array<i32: 0>} : vector<256x4xi32>
    %68 = tpu.iota {dimensions = array<i32: 1>} : vector<256x4xi32>
    %c64_i32 = arith.constant 64 : i32
    %69 = vector.broadcast %c64_i32 : i32 to vector<256x4xi32>
    %70 = arith.muli %68, %69 : vector<256x4xi32>
    %71 = arith.cmpi sge, %67, %70 : vector<256x4xi32>
    %c64_i32_26 = arith.constant 64 : i32
    %72 = vector.broadcast %c64_i32_26 : i32 to vector<256x4xi32>
    %73 = arith.addi %70, %72 : vector<256x4xi32>
    %74 = arith.cmpi slt, %67, %73 : vector<256x4xi32>
    %75 = arith.andi %71, %74 : vector<256x4xi1>
    %76 = arith.extui %75 : vector<256x4xi1> to vector<256x4xi32>
    %77 = arith.sitofp %76 : vector<256x4xi32> to vector<256x4xf32>
    %cst_27 = arith.constant dense<0.000000e+00> : vector<1x4xf32>
    %78 = tpu.matmul %66, %77, %cst_27 {dimension_numbers = #tpu.dot_dimension_numbers<[1], [0], [0], [1], [0, 0, 1, 1], [], []>} : vector<1x256xf32>, vector<256x4xf32>, vector<1x4xf32> -> vector<1x4xf32>
    %c0_28 = arith.constant 0 : index
    %c0_29 = arith.constant 0 : index
    %c0_30 = arith.constant 0 : index
    %79 = vector.load %arg8[%c0_28, %c0_29, %c0_30] : memref<1x1x4xf32, #tpu.memory_space<vmem>>, vector<1x1x4xf32>
    %80 = vector.shape_cast %79 : vector<1x1x4xf32> to vector<1x4xf32>
    %81 = vector.shape_cast %78 : vector<1x4xf32> to vector<1x1x4xf32>
    tpu.vector_store %arg8[%c0_28, %c0_29, %c0_30], %81 {strides = array<i32>} : memref<1x1x4xf32, #tpu.memory_space<vmem>>, vector<1x1x4xf32>,
    return
  }
  func.func @transform_0(%arg0: i32) -> (i32, i32, i32) {
    %c0_i32 = arith.constant 0 : i32
    %c0_i32_0 = arith.constant 0 : i32
    %c0_i32_1 = arith.constant 0 : i32
    return %arg0, %c0_i32, %c0_i32_0 : i32, i32, i32
  }
  func.func @transform_1(%arg0: i32) -> (i32, i32) {
    %c0_i32 = arith.constant 0 : i32
    %c0_i32_0 = arith.constant 0 : i32
    %c0_i32_1 = arith.constant 0 : i32
    return %c0_i32, %c0_i32_0 : i32, i32
  }
  func.func @transform_2(%arg0: i32) -> (i32, i32) {
    %c0_i32 = arith.constant 0 : i32
    %c0_i32_0 = arith.constant 0 : i32
    %c0_i32_1 = arith.constant 0 : i32
    return %c0_i32, %c0_i32_0 : i32, i32
  }
  func.func @transform_3(%arg0: i32) -> (i32, i32) {
    %c0_i32 = arith.constant 0 : i32
    %c0_i32_0 = arith.constant 0 : i32
    %c0_i32_1 = arith.constant 0 : i32
    return %c0_i32, %c0_i32_0 : i32, i32
  }
  func.func @transform_4(%arg0: i32) -> (i32, i32) {
    %c0_i32 = arith.constant 0 : i32
    %c0_i32_0 = arith.constant 0 : i32
    %c0_i32_1 = arith.constant 0 : i32
    return %c0_i32, %c0_i32_0 : i32, i32
  }
  func.func @transform_5(%arg0: i32) -> (i32, i32) {
    %c0_i32 = arith.constant 0 : i32
    %c0_i32_0 = arith.constant 0 : i32
    %c0_i32_1 = arith.constant 0 : i32
    return %c0_i32, %c0_i32_0 : i32, i32
  }
  func.func @transform_6(%arg0: i32) -> (i32, i32) {
    %c0_i32 = arith.constant 0 : i32
    %c0_i32_0 = arith.constant 0 : i32
    %c0_i32_1 = arith.constant 0 : i32
    return %c0_i32, %c0_i32_0 : i32, i32
  }
  func.func @transform_7(%arg0: i32) -> (i32, i32, i32) {
    %c0_i32 = arith.constant 0 : i32
    %c0_i32_0 = arith.constant 0 : i32
    %c0_i32_1 = arith.constant 0 : i32
    return %arg0, %c0_i32, %c0_i32_0 : i32, i32, i32
  }
}

</mosaic_0001>

<bundles_post_ra>
// kernel: tpu_custom_call.1
= control target key start
LH: loop header
LB: loop body
LE: loop exit
PB: predicated region body
PF: predicated region fallthrough
CT: control target
= control target key end

     0   :  { %s1900_s0 = inlined_call_operand.vmem [shape: f32[2,2,256], index: 0, kind: input, shape index: {}]   ;;  %s1901_s1 = inlined_call_operand.vmem [shape: f32[32,4], index: 1, kind: input, shape index: {}]   ;;  %s1902_s2 = inlined_call_operand.vmem [shape: f32[32,1], index: 2, kind: input, shape index: {}]   ;;  %s1903_s3 = inlined_call_operand.vmem [shape: f32[32,32], index: 3, kind: input, shape index: {}]   ;;  %s1904_s4 = inlined_call_operand.vmem [shape: f32[32,1], index: 4, kind: input, shape index: {}]   ;;  %s1905_s5 = inlined_call_operand.vmem [shape: f32[1,32], index: 5, kind: input, shape index: {}]   ;;  %s1906_s6 = inlined_call_operand.<no memory space> [shape: f32[1,1], index: 6, kind: input, shape index: {}]   ;;  %s1907_s7 = inlined_call_operand.hbm [shape: f32[2,1,4], index: 7, kind: output, shape index: {}]  }
   0x1   :  { %v12_v0 = vstv %s1906_s6 }
   0x2   :  { %13 = vst [vmem:[#allocation2] sm:$0x1] %v12_v0 }
   0x3   :  { %14 = vsyncpa [#allocation4], 0 }
   0x4   :  { %16 = vsyncpa [#allocation4 + $0x1], 0  ;;  %s1536_s26 = smov 0   ;;  %s1538_s27 = smov 0  }
   0x5   :  { %s1540_s28 = smov 0   ;;  %s1542_s29 = smov 0  }
   0x6 LB: > { %s1557_s6 = sadd.s32 4294967295, %s1478_s29   ;;  %s1245_s30 = sadd.s32 4294967294, %s1478_s29   ;;  %s1478_s29 = sphi %s1542_s29, %s1919_s29   ;;  %s1474_s28 = sphi %s1540_s28, %s1918_s28   ;;  %s1470_s27 = sphi %s1538_s27, %s1917_s27   ;;  %s1466_s26 = sphi %s1536_s26, %s1916_s26  }
   0x7   : > { %s1561_s8 = sadd.s32 1, %s1478_s29   ;;  %s181_s9 = sadd.s32 1, %s1474_s28 }
   0x8   : > { %s178_s10 = ssub.s32 %s1478_s29, %s1561_s8  ;;  %p191_p0 = scmp.ne.s32.totalorder %s1474_s28, %s1470_s27 }
   0x9   : > { %p179_p1 = scmp.eq.s32.totalorder %s178_s10, 0  ;;  %p192_p2 = scmp.eq.s32.totalorder %s1557_s6, 1 }
   0xa   : > { %p197_p3 = scmp.ne.s32.totalorder %s1470_s27, %s1466_s26  ;;  %p198_p4 = scmp.eq.s32.totalorder %s1245_s30, 1 }
   0xb   : > { %s1572_s11 = scalar_select %p179_p1, %s1474_s28, %s181_s9  }
   0xc   : > { %p1574_p5 = por %p192_p2, %p191_p0  ;;  %p1578_p6 = por %p198_p4, %p197_p3 }
   0xd   : > { %p1248_p7 = scmp.ge.s32.totalorder %s1478_s29, 1  ;;  %p242_p8 = scmp.lt.s32.totalorder %s1478_s29, 3 }
   0xf   : > { %p243_p9 = pnand %p1248_p7, %p242_p8 }
  0x10   : > { %p273_p10 = scmp.lt.s32.totalorder (!%p243_p9), %s1557_s6, 1  ;;  %s1481_s19 = smov (!%p243_p9), 120  }
  0x11   : > { %246 = sbr.rel (%p243_p9) target bundleno = 1048 (0x418), region = 48  ;;  %s1482_s20 = smov (!%p243_p9), 56  }
  0x12   : > { %s1483_s21 = smov (!%p243_p9), 72   ;;  %s1484_s22 = smov (!%p243_p9), 8  }
  0x13   : > { %s1485_s23 = smov (!%p243_p9), 121   ;;  %s1486_s24 = smov (!%p243_p9), 1  }
  0x14   : > { %s1487_s25 = smov (!%p243_p9), 7   ;;  %s1488_s30 = smov (!%p243_p9), 127  }
  0x15   : > { %s271_s16 = sand.u32 (!%p243_p9), 1, %s1470_s27   ;;  %s1326_s17 = sshll.u32 (!%p243_p9), %s1557_s6, 4 }
  0x16   : > { %v279_v1 = vlaneseq  ;;  %v1480_v2 = vmov 1983009808   ;;  %s274_s14 = scalar_select %p273_p10, %s1557_s6, 1  ;;  %v1489_v10 = vmov 0.0   ;;  %v549_v11 = vld [vmem:[%s1902_s2 + $0x18] sm:$0xff]  ;;  %v548_v12 = vld [vmem:[%s1902_s2 + $0x10] sm:$0xff] }
  0x17   : > { %v296_v3 = vunpack.c.l.s4 %v1480_v2  ;;  %654 = vmatprep.mubr.f32.mxu0 %v1489_v10  ;;  %v1490_v13 = vmov 0   ;;  %v546_v14 = vld [vmem:[%s1902_s2] sm:$0xff]  ;;  %v547_v15 = vld [vmem:[%s1902_s2 + $0x8] sm:$0xff]  ;;  %v694_v16 = vld [vmem:[%s1904_s4 + $0x18] sm:$0xff]  ;;  %vm408_vm12 = vcmask 1041408  }
  0x18   : > { %v1586_v4 = vshrl.u32 %v279_v1, 7  ;;  %s1329_s15 = sshll.u32 %s274_s14, 2  ;;  %1416 = vset.pattern.permute.xlu0 %v1490_v13  ;;  %1417 = vset.pattern.permute.xlu1 %v1490_v13  ;;  %v693_v17 = vld [vmem:[%s1904_s4 + $0x10] sm:$0xff]  ;;  %v692_v18 = vld [vmem:[%s1904_s4 + $0x8] sm:$0xff]  ;;  %v691_v19 = vld [vmem:[%s1904_s4] sm:$0xff]  ;;  %v1623_v21 = vand.u32 127, %v279_v1 }
  0x19   : > { %v297_v5 = vunpack.c.0.s8 %v296_v3  ;;  %s277_s18 = scalar_lea.vmem %s1900_s0, %s1329_s15  ;;  %v826_v20 = vld [vmem:[#allocation2] sm:$0x1] }
  0x1a   : > { %v1594_v7 = vld [vmem:[%s277_s18] sm:$0xf]  ;;  %v1626_v22 = vadd.s32 128, %v1623_v21  ;;  %v282_v25 = vand.u32 63, %v1623_v21  ;;  %vm316_vm0 = vcmp.lt.s32.totalorder %v1623_v21, 120  ;;  %vm309_vm1 = vcmp.lt.s32.totalorder %v1623_v21, 56 }
  0x1b   : > { %v1592_v6 = vsub.s32 %v297_v5, %v1586_v4  ;;  %vm329_vm4 = vcmp.lt.s32.totalorder %v1623_v21, 72  ;;  %vm336_vm5 = vcmp.lt.s32.totalorder %v1623_v21, 8  ;;  %v284_v49 = vand.u32 7, %v1623_v21  ;;  %s272_s18 = scalar_lea.vmem [#allocation3], %s271_s16 }
  0x1c   : > { %v283_v26 = vand.u32 63, %v1626_v22  ;;  %vm292_vm2 = vcmp.ge.s32.totalorder %v282_v25, 56  ;;  %vm290_vm6 = vcmp.lt.s32.totalorder %v282_v25, 8  ;;  %v285_v50 = vand.u32 7, %v1626_v22 }
  0x1d   : > { %v301_v8 = vrot.slane %v1594_v7, %v1592_v6  ;;  %vm349_vm8 = vcmp.lt.s32.totalorder %v1623_v21, 121  ;;  %vm356_vm9 = vcmp.lt.s32.totalorder %v1623_v21, 1  ;;  %vm286_vm10 = vcmp.eq.s32.totalorder %v284_v49, 0 }
  0x1e   : > { %vm293_vm3 = vcmp.ge.s32.totalorder %v283_v26, 56  ;;  %vm291_vm7 = vcmp.lt.s32.totalorder %v283_v26, 8  ;;  %vm287_vm11 = vcmp.eq.s32.totalorder %v285_v50, 0  ;;  %vm369_vm13 = vcmp.lt.s32.totalorder %v1623_v21, 7 }
  0x1f   : > { %312 = vrot.lane.b32.xlu1 %v301_v8, %s1481_s19  ;;  %305 = vrot.lane.b32.xlu0 %v301_v8, %s1482_s20  ;;  %v302_v9 = vcombine.high %v301_v8, %v301_v8  ;;  %vm376_vm14 = vcmp.lt.s32.totalorder %v1623_v21, 127  ;;  %vm1654_vm15 = vcmp.eq.s32.totalorder %v284_v49, 7 }
  0x23   : > { %325 = vrot.lane.b32.xlu0 %v301_v8, %s1483_s21  ;;  %314 = vrot.lane.b32.xlu1 %v302_v9, %s1481_s19  ;;  %s1190_s19 = sshll.u32 %s272_s18, 4  ;;  %s1191_s19 = int_to_ptr.vmem [resolvable:$true] %s1190_s19 }
  0x27   : > { %327 = vrot.lane.b32.xlu1 %v302_v9, %s1483_s21  ;;  %307 = vrot.lane.b32.xlu0 %v302_v9, %s1482_s20 }
  0x2b   : > { %334 = vrot.lane.b32.xlu1 %v302_v9, %s1484_s22  ;;  %332 = vrot.lane.b32.xlu0 %v301_v8, %s1484_s22  ;;  %s1188_s22 = scalar_lea.hbm %s1907_s7, %s1326_s17 }
  0x2f   : > { %347 = vrot.lane.b32.xlu1 %v302_v9, %s1485_s23  ;;  %345 = vrot.lane.b32.xlu0 %v301_v8, %s1485_s23  ;;  %s1178_s23 = scalar_lea.sflag [#allocation4], %s271_s16 }
  0x33   : > { %354 = vrot.lane.b32.xlu1 %v302_v9, %s1486_s24  ;;  %352 = vrot.lane.b32.xlu0 %v301_v8, %s1486_s24  ;;  %s1418_s24 = scalar_lea.vmem %s1191_s19, 16 }
  0x34   : > { %p1419_p11 = scmp.ne.s32.totalorder %s1191_s19, %s1418_s24 }
  0x36   : > { %p1420_p12 = pnand %p1419_p11, %p1574_p5 }
  0x37   : > { %367 = vrot.lane.b32.xlu1 %v302_v9, %s1487_s25  ;;  %365 = vrot.lane.b32.xlu0 %v301_v8, %s1487_s25  ;;  %s1492_s25 = smov [#allocation3]  }
  0x38   : > { %p1421_p13 = pneg %p1420_p12 }
  0x3b   : > { %374 = vrot.lane.b32.xlu1 %v302_v9, %s1488_s30  ;;  %372 = vrot.lane.b32.xlu0 %v301_v8, %s1488_s30  ;;  %s1422_s30 = sshll.u32 %s1492_s25, 4  ;;  %s1423_s30 = int_to_ptr.vmem [resolvable:$false] %s1422_s30 }
  0x3c   : > { %s1424_s6 = scalar_lea.vmem %s1423_s30, 32  ;;  %p1425_p0 = scmp.lt.s32.totalorder %s1191_s19, %s1423_s30 }
  0x3d   : > { %p1426_p1 = scmp.lt.s32.totalorder %s1424_s6, %s1418_s24 }
  0x3f   : > { %567 = vperm.xlu0 %1416, %v549_v11   ;;  %562 = vperm.xlu1 %1417, %v548_v12   ;;  %p1427_p2 = por %p1426_p1, %p1425_p0 }
  0x41   : > { %p1428_p3 = pnand %p1427_p2, %p1421_p13 }
  0x43   : > { %552 = vperm.xlu0 %1416, %v546_v14   ;;  %557 = vperm.xlu1 %1417, %v547_v15  }
  0x47   : > { %712 = vperm.xlu1 %1417, %v694_v16   ;;  %707 = vperm.xlu0 %1416, %v693_v17  }
  0x4b   : > { %702 = vperm.xlu1 %1417, %v692_v18   ;;  %697 = vperm.xlu0 %1416, %v691_v19  }
  0x4f   : > { %829 = vperm.xlu1 %1417, %v826_v20  }
  0x91   : > { %v313_v23 = vpop.permute.xlu1 %312  ;;  %v306_v24 = vpop.permute.xlu0 %305 }
  0x95   : > { %v326_v27 = vpop.permute.xlu0 %325  ;;  %v315_v28 = vpop.permute.xlu1 %314 }
  0x96   : > { %v317_v31 = vsel %vm316_vm0, %v313_v23, %v315_v28  ;;  %v318_v32 = vsel %vm316_vm0, %v315_v28, %v313_v23  ;;  %vm1658_vm0 = vcmp.eq.s32.totalorder %v285_v50, 7 }
  0x99   : > { %v328_v29 = vpop.permute.xlu1 %327  ;;  %v308_v30 = vpop.permute.xlu0 %307 }
  0x9a   : > { %v310_v33 = vsel %vm309_vm1, %v306_v24, %v308_v30  ;;  %v311_v34 = vsel %vm309_vm1, %v308_v30, %v306_v24  ;;  %v330_v38 = vsel %vm329_vm4, %v326_v27, %v328_v29  ;;  %v331_v41 = vsel %vm329_vm4, %v328_v29, %v326_v27 }
  0x9b   : > { %v323_v35 = vsel %vm292_vm2, %v311_v34, %v317_v31  ;;  %v324_v36 = vsel %vm293_vm3, %v310_v33, %v318_v32  ;;  %vm534_vm1 = vcmask 1040384   ;;  %vm539_vm2 = vcmask 1042432  }
  0x9c   : > { %v387_v37 = vcombine.low %v323_v35, %v324_v36  ;;  %vm583_vm3 = vcmask 1043456   ;;  %vm570_vm4 = vcmask 31744  }
  0x9d   : > { %v335_v39 = vpop.permute.xlu1 %334  ;;  %v333_v40 = vpop.permute.xlu0 %332 }
  0x9e   : > { %v394_v42 = vrot.slane %v387_v37, %v1592_v6  ;;  %v337_v43 = vsel %vm336_vm5, %v333_v40, %v335_v39  ;;  %v338_v44 = vsel %vm336_vm5, %v335_v39, %v333_v40  ;;  %vm1908_vm5 = vcmask 261120  }
  0x9f   : > { %v343_v45 = vsel %vm290_vm6, %v330_v38, %v338_v44  ;;  %v344_v46 = vsel %vm291_vm7, %v331_v41, %v337_v43 }
  0xa0   : > { %v396_v47 = vmul.f32 %v394_v42, %v1594_v7  ;;  %v425_v48 = vcombine.low %v343_v45, %v344_v46 }
  0xa1   : > { %v348_v51 = vpop.permute.xlu1 %347  ;;  %v346_v52 = vpop.permute.xlu0 %345 }
  0xa2   : > { %v432_v53 = vrot.slane %v425_v48, %v1592_v6  ;;  %v404_v54 = vrot.slane %v396_v47, %v1592_v6  ;;  %v350_v56 = vsel %vm349_vm8, %v346_v52, %v348_v51  ;;  %v351_v60 = vsel %vm349_vm8, %v348_v51, %v346_v52 }
  0xa4   : > { %v434_v55 = vmul.f32 %v432_v53, %v1594_v7  ;;  %v405_v1 = vcombine.high %v404_v54, %v404_v54  ;;  %v409_v17 = vsel %vm408_vm12, %v404_v54, 0.0 }
  0xa5   : > { %v355_v57 = vpop.permute.xlu1 %354  ;;  %v353_v58 = vpop.permute.xlu0 %352  ;;  %v410_v31 = vrot.slane %v409_v17, 4 }
  0xa6   : > { %v442_v59 = vrot.slane %v434_v55, %v1592_v6  ;;  %v357_v61 = vsel %vm356_vm9, %v353_v58, %v355_v57  ;;  %v358_v62 = vsel %vm356_vm9, %v355_v57, %v353_v58  ;;  %v416_v16 = vsel %vm408_vm12, %v405_v1, 0.0 }
  0xa7   : > { %v363_v63 = vsel %vm286_vm10, %v350_v56, %v358_v62  ;;  %v364_v0 = vsel %vm287_vm11, %v351_v60, %v357_v61  ;;  %v417_v30 = vrot.slane %v416_v16, 4  ;;  %v411_v43 = vadd.f32 %v410_v31, %v409_v17 }
  0xa8   : > { %v443_v2 = vcombine.high %v442_v59, %v442_v59  ;;  %v462_v3 = vcombine.low %v363_v63, %v364_v0  ;;  %v446_v9 = vsel %vm408_vm12, %v442_v59, 0.0 }
  0xa9   : > { %v368_v5 = vpop.permute.xlu1 %367  ;;  %v366_v8 = vpop.permute.xlu0 %365  ;;  %v447_v18 = vrot.slane %v446_v9, 4  ;;  %v418_v40 = vadd.f32 %v417_v30, %v416_v16  ;;  %v412_v53 = vrot.slane %v411_v43, 2  ;;  %v542_v30 = vld [vmem:[%s1901_s1] sm:$0xff] }
  0xaa   : > { %v469_v11 = vrot.slane %v462_v3, %v1592_v6  ;;  %v453_v12 = vsel %vm408_vm12, %v443_v2, 0.0  ;;  %v370_v19 = vsel %vm369_vm13, %v366_v8, %v368_v5  ;;  %v371_v25 = vsel %vm369_vm13, %v368_v5, %v366_v8 }
  0xab   : > { %v454_v23 = vrot.slane %v453_v12, 4  ;;  %v448_v37 = vadd.f32 %v447_v18, %v446_v9  ;;  %v419_v49 = vrot.slane %v418_v40, 2  ;;  %v413_v63 = vadd.f32 %v412_v53, %v411_v43 }
  0xac   : > { %v471_v13 = vmul.f32 %v469_v11, %v1594_v7 }
  0xad   : > { %v375_v20 = vpop.permute.xlu1 %374  ;;  %v373_v22 = vpop.permute.xlu0 %372  ;;  %v455_v36 = vadd.f32 %v454_v23, %v453_v12  ;;  %v449_v48 = vrot.slane %v448_v37, 2  ;;  %v420_v60 = vadd.f32 %v419_v49, %v418_v40  ;;  %v414_v12 = vrot.slane %v413_v63, 1 }
  0xae   : > { %v479_v24 = vrot.slane %v471_v13, %v1592_v6  ;;  %v377_v26 = vsel %vm376_vm14, %v373_v22, %v375_v20  ;;  %v378_v27 = vsel %vm376_vm14, %v375_v20, %v373_v22 }
  0xaf   : > { %v383_v28 = vsel %vm1654_vm15, %v371_v25, %v377_v26  ;;  %v384_v29 = vsel %vm1658_vm0, %v370_v19, %v378_v27  ;;  %v456_v45 = vrot.slane %v455_v36, 2  ;;  %v450_v59 = vadd.f32 %v449_v48, %v448_v37 }
  0xb0   : > { %v480_v32 = vcombine.high %v479_v24, %v479_v24  ;;  %v483_v33 = vsel %vm408_vm12, %v479_v24, 0.0  ;;  %v499_v34 = vcombine.low %v383_v28, %v384_v29  ;;  %v421_v5 = vrot.slane %v420_v60, 1 }
  0xb1   : > { %v484_v35 = vrot.slane %v483_v33, 4  ;;  %v457_v55 = vadd.f32 %v456_v45, %v455_v36  ;;  %v451_v3 = vrot.slane %v450_v59, 1  ;;  %v415_v22 = vadd.f32 %v414_v12, %v413_v63  ;;  %v688_v63 = vld [vmem:[%s1903_s3 + $0x8] sm:$0xff] }
  0xb2   : > { %v506_v38 = vrot.slane %v499_v34, %v1592_v6  ;;  %v490_v39 = vsel %vm408_vm12, %v480_v32, 0.0  ;;  %v422_v18 = vadd.f32 %v421_v5, %v420_v60  ;;  %v543_v32 = vld [vmem:[%s1901_s1 + $0x8] sm:$0xff]  ;;  %v545_v34 = vld [vmem:[%s1901_s1 + $0x18] sm:$0xff]  ;;  %v926_v5 = vadd.s32 120, %v1586_v4 }
  0xb3   : > { %v491_v41 = vrot.slane %v490_v39, 4  ;;  %v485_v42 = vadd.f32 %v484_v35, %v483_v33  ;;  %v452_v17 = vadd.f32 %v451_v3, %v450_v59  ;;  %v544_v33 = vld [vmem:[%s1901_s1 + $0x10] sm:$0xff]  ;;  %v924_v12 = vadd.s32 104, %v1586_v4 }
  0xb4   : > { %v508_v44 = vmul.f32 %v506_v38, %v1594_v7 }
  0xb5   : > { %v492_v46 = vadd.f32 %v491_v41, %v490_v39  ;;  %v486_v51 = vrot.slane %v485_v42, 2  ;;  %v535_v27 = vsel %vm534_vm1, %v415_v22, %v452_v17  ;;  %v921_v17 = vadd.s32 80, %v1586_v4 }
  0xb6   : > { %v516_v47 = vrot.slane %v508_v44, %v1592_v6  ;;  %v458_v6 = vrot.slane %v457_v55, 1  ;;  %v919_v22 = vadd.s32 64, %v1586_v4 }
  0xb7   : > { %v493_v50 = vrot.slane %v492_v46, 2  ;;  %v487_v61 = vadd.f32 %v486_v51, %v485_v42 }
  0xb8   : > { %v517_v52 = vcombine.high %v516_v47, %v516_v47  ;;  %v520_v54 = vsel %vm408_vm12, %v516_v47, 0.0  ;;  %v459_v13 = vadd.f32 %v458_v6, %v457_v55  ;;  %v689_v6 = vld [vmem:[%s1903_s3 + $0x10] sm:$0xff] }
  0xb9   : > { %v521_v56 = vrot.slane %v520_v54, 4  ;;  %v494_v57 = vadd.f32 %v493_v50, %v492_v46  ;;  %v488_v9 = vrot.slane %v487_v61, 1 }
  0xba   : > { %v527_v58 = vsel %vm408_vm12, %v517_v52, 0.0  ;;  %v536_v25 = vsel %vm534_vm1, %v422_v18, %v459_v13  ;;  %v563_v40 = vpop.permute.xlu1 %562  ;;  %v568_v42 = vpop.permute.xlu0 %567  ;;  %v923_v13 = vadd.s32 96, %v1586_v4  ;;  %v936_v18 = vadd.s32 200, %v1586_v4 }
  0xbb   : > { %v528_v7 = vrot.slane %v527_v58, 4  ;;  %v522_v62 = vadd.f32 %v521_v56, %v520_v54  ;;  %v495_v2 = vrot.slane %v494_v57, 1  ;;  %v489_v20 = vadd.f32 %v488_v9, %v487_v61 }
  0xbc   : > { %v925_v9 = vadd.s32 112, %v1586_v4 }
  0xbd   : > { %v529_v0 = vadd.f32 %v528_v7, %v527_v58  ;;  %v523_v1 = vrot.slane %v522_v62, 2  ;;  %v496_v16 = vadd.f32 %v495_v2, %v494_v57  ;;  %v537_v29 = vsel %vm408_vm12, %v535_v27, %v489_v20 }
  0xbe   : > { %v558_v48 = vpop.permute.xlu1 %557  ;;  %v553_v50 = vpop.permute.xlu0 %552  ;;  %v942_v2 = vadd.s32 248, %v1586_v4  ;;  %v935_v20 = vadd.s32 192, %v1586_v4  ;;  %v932_v27 = vadd.s32 168, %v1586_v4 }
  0xbf   : > { %v530_v8 = vrot.slane %v529_v0, 2  ;;  %v524_v11 = vadd.f32 %v523_v1, %v522_v62  ;;  %v538_v26 = vsel %vm408_vm12, %v536_v25, %v496_v16  ;;  %v687_v62 = vld [vmem:[%s1903_s3] sm:$0xff]  ;;  %v1715_v1 = vmul.u32 64, %v1623_v21 }
  0xc0   : > { %v939_v21 = vadd.s32 224, %v1586_v4  ;;  %v937_v16 = vadd.s32 208, %v1586_v4  ;;  %v933_v25 = vadd.s32 176, %v1586_v4 }
  0xc1   : > { %v531_v14 = vadd.f32 %v530_v8, %v529_v0  ;;  %v525_v15 = vrot.slane %v524_v11, 1  ;;  %v690_v0 = vld [vmem:[%s1903_s3 + $0x18] sm:$0xff]  ;;  %v1719_v3 = vadd.s32 64, %v1715_v1  ;;  %v941_v8 = vadd.s32 240, %v1586_v4 }
  0xc2   : > { %vm975_vm6 = vcmp.ge.s32.totalorder %v942_v2, %v1715_v1  ;;  %vm959_vm8 = vcmp.ge.s32.totalorder %v926_v5, %v1715_v1  ;;  %vm958_vm13 = vcmp.ge.s32.totalorder %v925_v9, %v1715_v1 }
  0xc3   : > { %v532_v19 = vrot.slane %v531_v14, 1  ;;  %v526_v23 = vadd.f32 %v525_v15, %v524_v11  ;;  %v940_v11 = vadd.s32 232, %v1586_v4  ;;  %vm1008_vm7 = vcmp.lt.s32.totalorder %v942_v2, %v1719_v3 }
  0xc4   : > { %vm992_vm9 = vcmp.lt.s32.totalorder %v926_v5, %v1719_v3  ;;  %vm1040_vm10 = vmand %vm975_vm6, %vm1008_vm7  ;;  %vm974_vm11 = vcmp.ge.s32.totalorder %v941_v8, %v1715_v1  ;;  %vm1007_vm12 = vcmp.lt.s32.totalorder %v941_v8, %v1719_v3  ;;  %vm991_vm14 = vcmp.lt.s32.totalorder %v925_v9, %v1719_v3 }
  0xc5   : > { %v533_v24 = vadd.f32 %v532_v19, %v531_v14  ;;  %v540_v31 = vsel %vm539_vm2, %v537_v29, %v526_v23  ;;  %vm1024_vm15 = vmand %vm959_vm8, %vm992_vm9  ;;  %vm973_vm0 = vcmp.ge.s32.totalorder %v940_v11, %v1715_v1  ;;  %vm1006_vm1 = vcmp.lt.s32.totalorder %v940_v11, %v1719_v3 }
  0xc6   : > { %v938_v14 = vadd.s32 216, %v1586_v4  ;;  %v922_v15 = vadd.s32 88, %v1586_v4  ;;  %vm1023_vm6 = vmand %vm958_vm13, %vm991_vm14  ;;  %vm972_vm8 = vcmp.ge.s32.totalorder %v939_v21, %v1715_v1  ;;  %vm1005_vm9 = vcmp.lt.s32.totalorder %v939_v21, %v1719_v3 }
  0xc7   : > { %v541_v28 = vsel %vm539_vm2, %v538_v26, %v533_v24  ;;  %vm957_vm2 = vcmp.ge.s32.totalorder %v924_v12, %v1715_v1  ;;  %vm1038_vm7 = vmand %vm973_vm0, %vm1006_vm1  ;;  %v920_v19 = vadd.s32 72, %v1586_v4  ;;  %v934_v23 = vadd.s32 184, %v1586_v4 }
  0xc8   : > { %1251 = vmatprep.subr.msk.mxu0 %vm583_vm3, %v541_v28  ;;  %vm971_vm13 = vcmp.ge.s32.totalorder %v938_v14, %v1715_v1  ;;  %vm1004_vm14 = vcmp.lt.s32.totalorder %v938_v14, %v1719_v3  ;;  %vm955_vm0 = vcmp.ge.s32.totalorder %v922_v15, %v1715_v1  ;;  %vm988_vm1 = vcmp.lt.s32.totalorder %v922_v15, %v1719_v3 }
  0xc9   : > { %1252 = vmatpush1.msk.msra.mxu0 %vm583_vm3, %v540_v31  ;;  %vm990_vm3 = vcmp.lt.s32.totalorder %v924_v12, %v1719_v3  ;;  %v918_v24 = vadd.s32 56, %v1586_v4  ;;  %v917_v26 = vadd.s32 48, %v1586_v4  ;;  %v916_v28 = vadd.s32 40, %v1586_v4 }
  0xca   : > { %1253 = vmatmul.mubr.msk.f32.vlgmr.msra.gmra.mxu0 %vm570_vm4, %v542_v30  ;;  %v931_v29 = vadd.s32 160, %v1586_v4  ;;  %v915_v30 = vadd.s32 32, %v1586_v4  ;;  %v930_v31 = vadd.s32 152, %v1586_v4  ;;  %v834_v2 = vsub.s32 0, %v1586_v4 }
  0xcb   : > { %660 = vmatprep.mubr.f32.mxu0 %v1489_v10 }
  0xce   : > { %1254 = vmatmul.mubr.msk.f32.gmra.mxu0 %vm570_vm4, %v543_v32  ;;  %v914_v32 = vadd.s32 24, %v1586_v4 }
  0xcf   : > { %666 = vmatprep.mubr.f32.mxu0 %v1489_v10 }
  0xd2   : > { %1255 = vmatmul.mubr.msk.f32.gmra.mxu0 %vm570_vm4, %v544_v33 }
  0xd3   : > { %672 = vmatprep.mubr.f32.mxu0 %v1489_v10 }
  0xd6   : > { %1256 = vmatmul.mubr.msk.f32.gmra.mxu0 %vm570_vm4, %v545_v34  ;;  %vm1039_vm4 = vmand %vm974_vm11, %vm1007_vm12  ;;  %vm989_vm11 = vcmp.lt.s32.totalorder %v923_v13, %v1719_v3 }
  0xd7   : > { %792 = vmatprep.mubr.f32.mxu0 %v1489_v10  ;;  %vm1022_vm12 = vmand %vm957_vm2, %vm990_vm3  ;;  %vm970_vm2 = vcmp.ge.s32.totalorder %v937_v16, %v1715_v1  ;;  %vm1003_vm3 = vcmp.lt.s32.totalorder %v937_v16, %v1719_v3 }
 0x18a   : > { %v656_v35 = vpop.f32.mrf.mxu0 }
 0x18b   : > { %v657_v57 = vadd.f32 %v656_v35, %v553_v50 }
 0x18c   : > { %v658_v36 = vpop.f32.mrf.mxu0 }
 0x18d   : > { %v659_v55 = vadd.f32 %v658_v36, %v553_v50  ;;  %v679_v61 = vmax.f32 %v657_v57, 0.0 }
 0x18e   : > { %v662_v37 = vpop.f32.mrf.mxu0 }
 0x18f   : > { %v663_v53 = vadd.f32 %v662_v37, %v558_v48  ;;  %v680_v7 = vmax.f32 %v659_v55, 0.0 }
 0x190   : > { %v664_v38 = vpop.f32.mrf.mxu0 }
 0x191   : > { %v665_v51 = vadd.f32 %v664_v38, %v558_v48  ;;  %v681_v60 = vmax.f32 %v663_v53, 0.0  ;;  %v713_v38 = vpop.permute.xlu1 %712 }
 0x192   : > { %v668_v39 = vpop.f32.mrf.mxu0 }
 0x193   : > { %v669_v49 = vadd.f32 %v668_v39, %v563_v40  ;;  %v682_v59 = vmax.f32 %v665_v51, 0.0 }
 0x194   : > { %v670_v41 = vpop.f32.mrf.mxu0 }
 0x195   : > { %v671_v46 = vadd.f32 %v670_v41, %v563_v40  ;;  %v683_v58 = vmax.f32 %v669_v49, 0.0  ;;  %v708_v40 = vpop.permute.xlu0 %707 }
 0x196   : > { %v674_v43 = vpop.f32.mrf.mxu0 }
 0x197   : > { %v675_v44 = vadd.f32 %v674_v43, %v568_v42  ;;  %v684_v56 = vmax.f32 %v671_v46, 0.0  ;;  %v703_v46 = vpop.permute.xlu1 %702 }
 0x198   : > { %v676_v45 = vpop.f32.mrf.mxu0 }
 0x199   : > { %v677_v47 = vadd.f32 %v676_v45, %v568_v42  ;;  %v685_v54 = vmax.f32 %v675_v44, 0.0  ;;  %v698_v50 = vpop.permute.xlu0 %697 }
 0x19b   : > { %v686_v52 = vmax.f32 %v677_v47, 0.0  ;;  %v830_v5 = vpop.permute.xlu1 %829 }
 0x19c   : > { %v835_v9 = vrot.slane %v830_v5, %v834_v2 }
 0x19d   : > { %752 = vmatprep.subr.mxu0 %v686_v52 }
 0x19e   : > { %753 = vmatpush1.msra.mxu0 %v685_v54 }
 0x19f   : > { %754 = vmatprep.subr.mxu0 %v684_v56 }
 0x1a0   : > { %755 = vmatpush1.msra.mxu0 %v683_v58 }
 0x1a1   : > { %756 = vmatprep.subr.mxu0 %v682_v59 }
 0x1a2   : > { %757 = vmatpush1.msra.mxu0 %v681_v60 }
 0x1a3   : > { %758 = vmatprep.subr.mxu0 %v680_v7  ;;  %v825_v7 = vld [vmem:[%s1905_s5] sm:$0x1] }
 0x1a4   : > { %759 = vmatpush1.msra.mxu0 %v679_v61  ;;  %v929_v61 = vadd.s32 144, %v1586_v4 }
 0x1a5   : > { %1257 = vmatmul.mubr.msk.f32.vlgmr.msra.gmra.mxu0 %vm1908_vm5, %v687_v62  ;;  %v913_v62 = vadd.s32 16, %v1586_v4 }
 0x1a6   : > { %798 = vmatprep.mubr.f32.mxu0 %v1489_v10 }
 0x1a9   : > { %1258 = vmatmul.mubr.msk.f32.gmra.mxu0 %vm1908_vm5, %v688_v63  ;;  %v928_v63 = vadd.s32 136, %v1586_v4 }
 0x1aa   : > { %804 = vmatprep.mubr.f32.mxu0 %v1489_v10 }
 0x1ad   : > { %1259 = vmatmul.mubr.msk.f32.gmra.mxu0 %vm1908_vm5, %v689_v6  ;;  %v912_v6 = vadd.s32 8, %v1586_v4 }
 0x1ae   : > { %810 = vmatprep.mubr.f32.mxu0 %v1489_v10 }
 0x1b1   : > { %1260 = vmatmul.mubr.msk.f32.gmra.mxu0 %vm1908_vm5, %v690_v0  ;;  %vm996_vm5 = vcmp.lt.s32.totalorder %v930_v31, %v1719_v3  ;;  %v927_v0 = vadd.s32 128, %v1586_v4 }
 0x1b2   : > { %903 = vmatprep.mubr.f32.mxu0 %v1489_v10  ;;  %v1491_v10 = vmov 1.0  }
 0x1b3   : > { %1330 = vmatprep.subr.msk.mxu1 %vm1040_vm10, %v1491_v10  ;;  %vm956_vm10 = vcmp.ge.s32.totalorder %v923_v13, %v1715_v1 }
 0x1b4   : > { %1331 = vmatpush3.msk.msra.mxu1 %vm1024_vm15, %v1491_v10  ;;  %vm1037_vm15 = vmand %vm972_vm8, %vm1005_vm9  ;;  %vm987_vm8 = vcmp.lt.s32.totalorder %v921_v17, %v1719_v3 }
 0x1b5   : > { %1332 = vmatprep.subr.msk.mxu1 %vm1039_vm4, %v1491_v10  ;;  %vm1021_vm4 = vmand %vm956_vm10, %vm989_vm11  ;;  %vm969_vm10 = vcmp.ge.s32.totalorder %v936_v18, %v1715_v1  ;;  %vm1002_vm11 = vcmp.lt.s32.totalorder %v936_v18, %v1719_v3 }
 0x1b6   : > { %1333 = vmatpush3.msk.msra.mxu1 %vm1023_vm6, %v1491_v10  ;;  %vm1036_vm6 = vmand %vm971_vm13, %vm1004_vm14  ;;  %vm953_vm13 = vcmp.ge.s32.totalorder %v920_v19, %v1715_v1  ;;  %vm986_vm14 = vcmp.lt.s32.totalorder %v920_v19, %v1719_v3 }
 0x1b7   : > { %1334 = vmatprep.subr.msk.mxu1 %vm1038_vm7, %v1491_v10  ;;  %vm954_vm7 = vcmp.ge.s32.totalorder %v921_v17, %v1715_v1  ;;  %vm1020_vm9 = vmand %vm955_vm0, %vm988_vm1  ;;  %vm968_vm0 = vcmp.ge.s32.totalorder %v935_v20, %v1715_v1  ;;  %vm1001_vm1 = vcmp.lt.s32.totalorder %v935_v20, %v1719_v3 }
 0x1b8   : > { %1335 = vmatpush3.msk.msra.mxu1 %vm1022_vm12, %v1491_v10  ;;  %vm1035_vm12 = vmand %vm970_vm2, %vm1003_vm3  ;;  %vm952_vm2 = vcmp.ge.s32.totalorder %v919_v22, %v1715_v1  ;;  %vm985_vm3 = vcmp.lt.s32.totalorder %v919_v22, %v1719_v3 }
 0x1b9   : > { %1336 = vmatprep.subr.msk.mxu1 %vm1037_vm15, %v1491_v10  ;;  %vm1019_vm15 = vmand %vm954_vm7, %vm987_vm8  ;;  %vm967_vm7 = vcmp.ge.s32.totalorder %v934_v23, %v1715_v1  ;;  %vm1000_vm8 = vcmp.lt.s32.totalorder %v934_v23, %v1719_v3 }
 0x1ba   : > { %1337 = vmatpush3.msk.msra.mxu1 %vm1021_vm4, %v1491_v10  ;;  %vm1034_vm4 = vmand %vm969_vm10, %vm1002_vm11  ;;  %vm951_vm10 = vcmp.ge.s32.totalorder %v918_v24, %v1715_v1  ;;  %vm984_vm11 = vcmp.lt.s32.totalorder %v918_v24, %v1719_v3 }
 0x1bb   : > { %1338 = vmatprep.subr.msk.mxu1 %vm1036_vm6, %v1491_v10  ;;  %vm1018_vm6 = vmand %vm953_vm13, %vm986_vm14  ;;  %vm966_vm13 = vcmp.ge.s32.totalorder %v933_v25, %v1715_v1  ;;  %vm999_vm14 = vcmp.lt.s32.totalorder %v933_v25, %v1719_v3 }
 0x1bc   : > { %1339 = vmatpush3.msk.msra.mxu1 %vm1020_vm9, %v1491_v10  ;;  %vm1033_vm9 = vmand %vm968_vm0, %vm1001_vm1  ;;  %vm950_vm0 = vcmp.ge.s32.totalorder %v917_v26, %v1715_v1  ;;  %vm983_vm1 = vcmp.lt.s32.totalorder %v917_v26, %v1719_v3 }
 0x1bd   : > { %1340 = vmatprep.subr.msk.mxu1 %vm1035_vm12, %v1491_v10  ;;  %vm1017_vm12 = vmand %vm952_vm2, %vm985_vm3  ;;  %vm965_vm2 = vcmp.ge.s32.totalorder %v932_v27, %v1715_v1  ;;  %vm998_vm3 = vcmp.lt.s32.totalorder %v932_v27, %v1719_v3 }
 0x1be   : > { %1341 = vmatpush3.msk.msra.mxu1 %vm1019_vm15, %v1491_v10  ;;  %vm1032_vm15 = vmand %vm967_vm7, %vm1000_vm8  ;;  %vm949_vm7 = vcmp.ge.s32.totalorder %v916_v28, %v1715_v1  ;;  %vm982_vm8 = vcmp.lt.s32.totalorder %v916_v28, %v1719_v3 }
 0x1bf   : > { %1342 = vmatprep.subr.msk.mxu1 %vm1034_vm4, %v1491_v10  ;;  %vm1016_vm4 = vmand %vm951_vm10, %vm984_vm11  ;;  %vm964_vm10 = vcmp.ge.s32.totalorder %v931_v29, %v1715_v1  ;;  %vm997_vm11 = vcmp.lt.s32.totalorder %v931_v29, %v1719_v3 }
 0x1c0   : > { %1343 = vmatpush3.msk.msra.mxu1 %vm1018_vm6, %v1491_v10  ;;  %vm1031_vm6 = vmand %vm966_vm13, %vm999_vm14  ;;  %vm981_vm13 = vcmp.lt.s32.totalorder %v915_v30, %v1719_v3 }
 0x1c1   : > { %1344 = vmatprep.subr.msk.mxu1 %vm1033_vm9, %v1491_v10  ;;  %vm1015_vm9 = vmand %vm950_vm0, %vm983_vm1  ;;  %vm947_vm1 = vcmp.ge.s32.totalorder %v914_v32, %v1715_v1 }
 0x1c2   : > { %1345 = vmatpush3.msk.msra.mxu1 %vm1017_vm12, %v1491_v10  ;;  %vm1030_vm12 = vmand %vm965_vm2, %vm998_vm3 }
 0x1c3   : > { %1346 = vmatprep.subr.msk.mxu1 %vm1032_vm15, %v1491_v10  ;;  %vm948_vm15 = vcmp.ge.s32.totalorder %v915_v30, %v1715_v1  ;;  %vm1014_vm14 = vmand %vm949_vm7, %vm982_vm8  ;;  %vm962_vm8 = vcmp.ge.s32.totalorder %v929_v61, %v1715_v1 }
 0x1c4   : > { %1347 = vmatpush3.msk.msra.mxu1 %vm1016_vm4, %v1491_v10  ;;  %vm963_vm4 = vcmp.ge.s32.totalorder %v930_v31, %v1715_v1  ;;  %vm1029_vm0 = vmand %vm964_vm10, %vm997_vm11  ;;  %vm946_vm11 = vcmp.ge.s32.totalorder %v913_v62, %v1715_v1 }
 0x1c5   : > { %1348 = vmatprep.subr.msk.mxu1 %vm1031_vm6, %v1491_v10  ;;  %vm980_vm6 = vcmp.lt.s32.totalorder %v914_v32, %v1719_v3  ;;  %vm1013_vm2 = vmand %vm948_vm15, %vm981_vm13  ;;  %vm961_vm13 = vcmp.ge.s32.totalorder %v928_v63, %v1715_v1 }
 0x1c6   : > { %1349 = vmatpush3.msk.msra.mxu1 %vm1015_vm9, %v1491_v10  ;;  %vm1028_vm3 = vmand %vm963_vm4, %vm996_vm5  ;;  %vm1915_vm5 = vcmask 261120   ;;  %vm995_vm9 = vcmp.lt.s32.totalorder %v929_v61, %v1719_v3 }
 0x1c7   : > { %1350 = vmatprep.subr.msk.mxu1 %vm1030_vm12, %v1491_v10  ;;  %vm1012_vm7 = vmand %vm947_vm1, %vm980_vm6  ;;  %vm979_vm12 = vcmp.lt.s32.totalorder %v913_v62, %v1719_v3  ;;  %vm978_vm1 = vcmp.lt.s32.totalorder %v912_v6, %v1719_v3  ;;  %vm944_vm6 = vcmp.ge.s32.totalorder %v1586_v4, %v1715_v1 }
 0x1c8   : > { %1351 = vmatpush3.msk.msra.mxu1 %vm1014_vm14, %v1491_v10  ;;  %vm1027_vm10 = vmand %vm962_vm8, %vm995_vm9  ;;  %vm994_vm14 = vcmp.lt.s32.totalorder %v928_v63, %v1719_v3 }
 0x1c9   : > { %1352 = vmatprep.subr.msk.mxu1 %vm1029_vm0, %v1491_v10  ;;  %vm1011_vm15 = vmand %vm946_vm11, %vm979_vm12  ;;  %vm945_vm0 = vcmp.ge.s32.totalorder %v912_v6, %v1715_v1 }
 0x1ca   : > { %1353 = vmatpush3.msk.msra.mxu1 %vm1013_vm2, %v1491_v10  ;;  %vm1026_vm4 = vmand %vm961_vm13, %vm994_vm14  ;;  %vm977_vm2 = vcmp.lt.s32.totalorder %v1586_v4, %v1719_v3 }
 0x1cb   : > { %1354 = vmatprep.subr.msk.mxu1 %vm1028_vm3, %v1491_v10  ;;  %vm1010_vm3 = vmand %vm945_vm0, %vm978_vm1 }
 0x1cc   : > { %1355 = vmatpush3.msk.msra.mxu1 %vm1012_vm7, %v1491_v10  ;;  %vm960_vm7 = vcmp.ge.s32.totalorder %v927_v0, %v1715_v1  ;;  %vm1009_vm9 = vmand %vm944_vm6, %vm977_vm2 }
 0x1cd   : > { %1356 = vmatprep.subr.msk.mxu1 %vm1027_vm10, %v1491_v10  ;;  %vm1175_vm10 = vcmask 24576  }
 0x1ce   : > { %1357 = vmatpush3.msk.msra.mxu1 %vm1011_vm15, %v1491_v10 }
 0x1cf   : > { %1358 = vmatprep.subr.msk.mxu1 %vm1026_vm4, %v1491_v10 }
 0x1d0   : > { %1359 = vmatpush3.msk.msra.mxu1 %vm1010_vm3, %v1491_v10 }
 0x265   : > { %v794_v33 = vpop.f32.mrf.mxu0 }
 0x266   : > { %v795_v55 = vadd.f32 %v794_v33, %v698_v50 }
 0x267   : > { %v796_v34 = vpop.f32.mrf.mxu0 }
 0x268   : > { %v797_v53 = vadd.f32 %v796_v34, %v698_v50  ;;  %v817_v60 = vmax.f32 %v795_v55, 0.0 }
 0x269   : > { %v800_v35 = vpop.f32.mrf.mxu0 }
 0x26a   : > { %v801_v51 = vadd.f32 %v800_v35, %v703_v46  ;;  %v818_v59 = vmax.f32 %v797_v53, 0.0 }
 0x26b   : > { %v802_v36 = vpop.f32.mrf.mxu0 }
 0x26c   : > { %v803_v48 = vadd.f32 %v802_v36, %v703_v46  ;;  %v819_v58 = vmax.f32 %v801_v51, 0.0 }
 0x26d   : > { %v806_v37 = vpop.f32.mrf.mxu0 }
 0x26e   : > { %v807_v47 = vadd.f32 %v806_v37, %v708_v40  ;;  %v820_v57 = vmax.f32 %v803_v48, 0.0 }
 0x26f   : > { %v808_v39 = vpop.f32.mrf.mxu0 }
 0x270   : > { %v809_v44 = vadd.f32 %v808_v39, %v708_v40  ;;  %v821_v56 = vmax.f32 %v807_v47, 0.0 }
 0x271   : > { %v812_v41 = vpop.f32.mrf.mxu0 }
 0x272   : > { %v813_v42 = vadd.f32 %v812_v41, %v713_v38  ;;  %v822_v54 = vmax.f32 %v809_v44, 0.0 }
 0x273   : > { %v814_v43 = vpop.f32.mrf.mxu0 }
 0x274   : > { %v815_v45 = vadd.f32 %v814_v43, %v713_v38  ;;  %v823_v52 = vmax.f32 %v813_v42, 0.0 }
 0x276   : > { %v824_v49 = vmax.f32 %v815_v45, 0.0 }
 0x278   : > { %863 = vmatprep.subr.mxu0 %v824_v49 }
 0x279   : > { %864 = vmatpush1.msra.mxu0 %v823_v52 }
 0x27a   : > { %865 = vmatprep.subr.mxu0 %v822_v54 }
 0x27b   : > { %866 = vmatpush1.msra.mxu0 %v821_v56 }
 0x27c   : > { %867 = vmatprep.subr.mxu0 %v820_v57 }
 0x27d   : > { %868 = vmatpush1.msra.mxu0 %v819_v58 }
 0x27e   : > { %869 = vmatprep.subr.mxu0 %v818_v59 }
 0x27f   : > { %870 = vmatpush1.msra.mxu0 %v817_v60 }
 0x280   : > { %1261 = vmatmul.mubr.msk.f32.vlgmr.msra.gmra.mxu0 %vm1915_vm5, %v825_v7  ;;  %vm993_vm5 = vcmp.lt.s32.totalorder %v927_v0, %v1719_v3 }
 0x281   : > { %vm1025_vm8 = vmand %vm960_vm7, %vm993_vm5 }
 0x282   : > { %1360 = vmatprep.subr.msk.mxu1 %vm1025_vm8, %v1491_v10 }
 0x283   : > { %1361 = vmatpush3.msk.msra.mxu1 %vm1009_vm9, %v1491_v10 }
 0x340   : > { %v905_v8 = vpop.f32.mrf.mxu0 }
 0x341   : > { %v906_v1 = vadd.f32 %v905_v8, %v835_v9 }
 0x342   : > { %v907_v11 = vpop.f32.mrf.mxu0 }
 0x343   : > { %v908_v12 = vadd.f32 %v907_v11, %v835_v9 }
 0x345   : > { %1169 = vmatprep.mubr.f32.mxu1 %v908_v12 }
 0x346   : > { %1170 = vmatmul.mubr.f32.vlgmr.msra.gmra.mxu1 %v906_v1 }
 0x406   : > { %v1362_v3 = vpop.f32.mrf.mxu1 }
 0x408   : > { %v1363_v21 = vpop.f32.mrf.mxu1 }
 0x409   : > { %v1364_v13 = vadd.f32 %v1363_v21, %v1362_v3 }
 0x40b   : > { %1176 = vst.msk [vmem:[%s272_s18] sm:$0x1] %vm1175_vm10, %v1364_v13 }
 0x40c   : > { %1431 = shalt.err (!%p1428_p3)
}
 0x40d   : > { %s1432_s9 = scalar_lea.hbm %s1188_s22, 16  ;;  %s1436_s15 = scalar_lea.hbm %s1907_s7, 32 }
 0x40e   : > { %p1433_p4 = scmp.ne.s32.totalorder %s1188_s22, %s1432_s9  ;;  %p1437_p9 = scmp.lt.s32.totalorder %s1188_s22, %s1907_s7 }
 0x40f   : > { %p1438_p10 = scmp.lt.s32.totalorder %s1436_s15, %s1432_s9 }
 0x410   : > { %p1434_p7 = pnand %p1433_p4, %p1574_p5 }
 0x411   : > { %p1439_p11 = por %p1438_p10, %p1437_p9 }
 0x412   : > { %p1435_p8 = pneg %p1434_p7 }
 0x414   : > { %p1440_p12 = pnand %p1439_p11, %p1435_p8 }
 0x416   : > { %1443 = shalt.err (!%p1440_p12)
}
 0x417   : > { %1365 = dma.vmem_to_hbm [thread:$0]  (%p1574_p5), %s1191_s19, 16, %s1188_s22, %s1178_s23  }
 0x418 PF: > { %p1371_p13 = scmp.ge.s32.totalorder %s1478_s29, 2  ;;  %s1202_s18 = sand.u32 1, %s1466_s26  }
 0x419   : > { %s1203_s20 = scalar_lea.sflag [#allocation4], %s1202_s18 }
 0x41a   : > { %p1368_p0 = pnand %p1371_p13, %p1578_p6 }
 0x41c   : > { %p1369_p1 = pneg %p1368_p0 }
 0x41e   : > { %1461 = dma.done.wait (%p1369_p1), %s1203_s20, 16  }
 0x41f   : > { %1463 = vsyncadd (%p1369_p1), %s1203_s20, 4294967280  ;;  %p19_p2 = scmp.ge.s32.totalorder %s1561_s8, 4   ;;  %s1916_s26 = smov %s1470_s27 }
 0x420   : > { %s1917_s27 = smov %s1474_s28  ;;  %s1918_s28 = smov %s1572_s11 }
 0x421   : > { %s1919_s29 = smov %s1561_s8  ;;  %21 = sbr.rel (!%p19_p2) target bundleno = 6 (0x6), region = 83 }
 0x426   :  { %1207 = vsyncpa [#allocation4], 1 }
 0x427   :  { %1209 = vsyncpa [#allocation4 + $0x1], 1 }

</bundles_post_ra>
